<compile_context>
chip_gen: v5e
topology: v5e:2x2
jax: 0.10.0
libtpu: 0.0.40
codegen_flags: <defaults>
</compile_context>

<pallas_src>
import functools

import jax
import jax.numpy as jnp
from jax.experimental import pallas as pl
from jax.experimental.pallas import tpu as pltpu


def _round_up(n, m):
    return ((n + m - 1) // m) * m


def _mlp_kernel(x_ref, w1_ref, b1_ref, w2_ref, b2_ref, w3_ref, b3_ref, o_ref):
    cd = w1_ref.dtype  # compute dtype for MXU operands (bf16 by default)

    # Layer 1: Linear + ReLU  (MXU matmul w/ f32 accumulation, VPU add/max in f32)
    h = jnp.dot(x_ref[...].astype(cd), w1_ref[...],
                preferred_element_type=jnp.float32)
    h = jnp.maximum(h + b1_ref[...], 0.0)

    # Layer 2: Linear + ReLU
    h = jnp.dot(h.astype(cd), w2_ref[...],
                preferred_element_type=jnp.float32)
    h = jnp.maximum(h + b2_ref[...], 0.0)

    # Layer 3: Linear (logits, lane-dense padded output -> unmasked stores)
    out = jnp.dot(h.astype(cd), w3_ref[...],
                  preferred_element_type=jnp.float32)
    o_ref[...] = (out + b3_ref[...]).astype(o_ref.dtype)


@functools.partial(jax.jit, static_argnames=("tm",))
def mlp_forward(x, params, *, tm=128):
    """Fused MLP forward. x: [batch, n_input] f32. Returns [batch, n_output] f32."""
    w1, b1, w2, b2, w3, b3 = params
    batch, n_in = x.shape
    h0 = w1.shape[1]
    h1 = w2.shape[1]
    n_out = w3.shape[1]

    compute_dtype = jnp.bfloat16

    # ---- Lane-dense final projection: pad output columns to a multiple of 128.
    n_out_p = _round_up(n_out, 128)
    w3p = jnp.zeros((h1, n_out_p), w3.dtype).at[:, :n_out].set(w3)
    b3p = jnp.zeros((1, n_out_p), b3.dtype).at[:, :n_out].set(b3)

    # ---- Batch tiling: round batch up to a multiple of the row tile.
    tm = min(tm, _round_up(batch, 8))
    batch_p = _round_up(batch, tm)
    if batch_p != batch:
        x = jnp.pad(x, ((0, batch_p - batch), (0, 0)))
    grid = (batch_p // tm,)

    # ---- MXU operands in bf16 (weights cast once, DMA'd once, stay resident);
    #      biases stay f32 for the VPU add.
    w1c = w1.astype(compute_dtype)
    w2c = w2.astype(compute_dtype)
    w3c = w3p.astype(compute_dtype)

    resident = lambda shape: pl.BlockSpec(shape, lambda i: (0, 0))

    out = pl.pallas_call(
        _mlp_kernel,
        out_shape=jax.ShapeDtypeStruct((batch_p, n_out_p), jnp.float32),
        grid=grid,
        in_specs=[
            pl.BlockSpec((tm, n_in), lambda i: (i, 0)),   # x: streamed by rows
            resident((n_in, h0)),                         # w1 (VMEM-resident)
            resident((1, h0)),                            # b1
            resident((h0, h1)),                           # w2
            resident((1, h1)),                            # b2
            resident((h1, n_out_p)),                      # w3 (padded, lane-dense)
            resident((1, n_out_p)),                       # b3 (padded)
        ],
        out_specs=pl.BlockSpec((tm, n_out_p), lambda i: (i, 0)),
        compiler_params=pltpu.CompilerParams(
            dimension_semantics=("parallel",)),           # megacore split on v7x
    )(x, w1c, b1, w2c, b2, w3c, b3p)

    # Slice away batch / lane padding.
    return out[:batch, :n_out]


def init_params(key, n_input, n_hidden, n_output):
    """Deterministic init mimicking nn.Linear default U(-1/sqrt(fan_in), ...).

    Weights are stored as [in, out] (transpose of PyTorch's [out, in])."""
    h0, h1 = n_hidden
    dims = [(n_input, h0), (h0, h1), (h1, n_output)]
    params = []
    for fan_in, fan_out in dims:
        key, kw, kb = jax.random.split(key, 3)
        bound = 1.0 / (fan_in ** 0.5)
        w = jax.random.uniform(kw, (fan_in, fan_out), jnp.float32, -bound, bound)
        b = jax.random.uniform(kb, (1, fan_out), jnp.float32, -bound, bound)
        params += [w, b]
    return tuple(params)


def mlp_reference(x, params, compute_dtype=jnp.float32):
    """Pure-JAX reference; compute_dtype mirrors the kernel's MXU operand cast."""
    w1, b1, w2, b2, w3, b3 = params
    cd = compute_dtype
    h = jnp.dot(x.astype(cd), w1.astype(cd),
                preferred_element_type=jnp.float32) + b1
    h = jnp.maximum(h, 0.0)
    h = jnp.dot(h.astype(cd), w2.astype(cd),
                preferred_element_type=jnp.float32) + b2
    h = jnp.maximum(h, 0.0)
    return jnp.dot(h.astype(cd), w3.astype(cd),
                   preferred_element_type=jnp.float32) + b3


if __name__ == "__main__":
    # Titanic-like shapes: small feature vector in, 2 logits out.
    # batch=256 exercises the batch grid (two 128-row tiles).
    batch, n_input, n_hidden, n_output = 256, 16, (32, 32), 2

    key = jax.random.PRNGKey(0)
    key, kx = jax.random.split(key)
    x = jax.random.normal(kx, (batch, n_input), jnp.float32)
    params = init_params(key, n_input, n_hidden, n_output)

    out = mlp_forward(x, params)
    out = jax.block_until_ready(out)
    assert out.shape == (batch, n_output), out.shape

    # Exact-semantics check (bf16 matmul operands, f32 accumulation).
    ref_bf16 = mlp_reference(x, params, compute_dtype=jnp.bfloat16)
    assert jnp.allclose(out, ref_bf16, atol=1e-4, rtol=1e-4), \
        "mismatch vs matched (bf16-operand) JAX reference"

    # Loose check vs pure-f32 forward of the original module.
    ref_f32 = mlp_reference(x, params, compute_dtype=jnp.float32)
    assert jnp.allclose(out, ref_f32, atol=1e-1, rtol=5e-2), \
        "mismatch vs f32 JAX reference"

    print("KERNEL_OK")
</pallas_src>

<mosaic_0001>
module attributes {stable_mosaic.version = 11 : i64} {
  func.func @_mlp_kernel(%arg0: i32, %arg1: memref<128x16xf32, #tpu.memory_space<vmem>>, %arg2: memref<16x32xbf16, #tpu.memory_space<vmem>>, %arg3: memref<1x32xf32, #tpu.memory_space<vmem>>, %arg4: memref<32x32xbf16, #tpu.memory_space<vmem>>, %arg5: memref<1x32xf32, #tpu.memory_space<vmem>>, %arg6: memref<32x128xbf16, #tpu.memory_space<vmem>>, %arg7: memref<1x128xf32, #tpu.memory_space<vmem>>, %arg8: memref<128x128xf32, #tpu.memory_space<vmem>>) attributes {dimension_semantics = [#tpu.dimension_semantics<parallel>], iteration_bounds = array<i64: 2>, scalar_prefetch = 0 : i64, scratch_operands = 0 : i64, tpu.core_type = #tpu.core_type<tc>, window_params = [{transform_indices = @transform_0, window_bounds = array<i64: 128, 16>}, {pipeline_mode = #tpu.pipeline_mode<synchronous>, transform_indices = @transform_1, window_bounds = array<i64: 16, 32>}, {pipeline_mode = #tpu.pipeline_mode<synchronous>, transform_indices = @transform_2, window_bounds = array<i64: 1, 32>}, {pipeline_mode = #tpu.pipeline_mode<synchronous>, transform_indices = @transform_3, window_bounds = array<i64: 32, 32>}, {pipeline_mode = #tpu.pipeline_mode<synchronous>, transform_indices = @transform_4, window_bounds = array<i64: 1, 32>}, {pipeline_mode = #tpu.pipeline_mode<synchronous>, transform_indices = @transform_5, window_bounds = array<i64: 32, 128>}, {pipeline_mode = #tpu.pipeline_mode<synchronous>, transform_indices = @transform_6, window_bounds = array<i64: 1, 128>}, {transform_indices = @transform_7, window_bounds = array<i64: 128, 128>}]} {
    %c0 = arith.constant 0 : index
    %c0_0 = arith.constant 0 : index
    %0 = vector.load %arg1[%c0, %c0_0] : memref<128x16xf32, #tpu.memory_space<vmem>>, vector<128x16xf32>
    %1 = arith.truncf %0 : vector<128x16xf32> to vector<128x16xbf16>
    %c0_1 = arith.constant 0 : index
    %c0_2 = arith.constant 0 : index
    %2 = vector.load %arg2[%c0_1, %c0_2] : memref<16x32xbf16, #tpu.memory_space<vmem>>, vector<16x32xbf16>
    %cst = arith.constant dense<0.000000e+00> : vector<128x32xf32>
    %3 = tpu.matmul %1, %2, %cst {dimension_numbers = #tpu.dot_dimension_numbers<[1], [0], [0], [1], [0, 0, 1, 1], [], []>} : vector<128x16xbf16>, vector<16x32xbf16>, vector<128x32xf32> -> vector<128x32xf32>
    %c0_3 = arith.constant 0 : index
    %c0_4 = arith.constant 0 : index
    %4 = vector.load %arg3[%c0_3, %c0_4] : memref<1x32xf32, #tpu.memory_space<vmem>>, vector<1x32xf32>
    %5 = vector.broadcast %4 : vector<1x32xf32> to vector<128x32xf32>
    %6 = arith.addf %3, %5 : vector<128x32xf32>
    %cst_5 = arith.constant 0.000000e+00 : f32
    %7 = vector.broadcast %cst_5 : f32 to vector<128x32xf32>
    %8 = arith.maximumf %6, %7 : vector<128x32xf32>
    %9 = arith.truncf %8 : vector<128x32xf32> to vector<128x32xbf16>
    %c0_6 = arith.constant 0 : index
    %c0_7 = arith.constant 0 : index
    %10 = vector.load %arg4[%c0_6, %c0_7] : memref<32x32xbf16, #tpu.memory_space<vmem>>, vector<32x32xbf16>
    %cst_8 = arith.constant dense<0.000000e+00> : vector<128x32xf32>
    %11 = tpu.matmul %9, %10, %cst_8 {dimension_numbers = #tpu.dot_dimension_numbers<[1], [0], [0], [1], [0, 0, 1, 1], [], []>} : vector<128x32xbf16>, vector<32x32xbf16>, vector<128x32xf32> -> vector<128x32xf32>
    %c0_9 = arith.constant 0 : index
    %c0_10 = arith.constant 0 : index
    %12 = vector.load %arg5[%c0_9, %c0_10] : memref<1x32xf32, #tpu.memory_space<vmem>>, vector<1x32xf32>
    %13 = vector.broadcast %12 : vector<1x32xf32> to vector<128x32xf32>
    %14 = arith.addf %11, %13 : vector<128x32xf32>
    %cst_11 = arith.constant 0.000000e+00 : f32
    %15 = vector.broadcast %cst_11 : f32 to vector<128x32xf32>
    %16 = arith.maximumf %14, %15 : vector<128x32xf32>
    %17 = arith.truncf %16 : vector<128x32xf32> to vector<128x32xbf16>
    %c0_12 = arith.constant 0 : index
    %c0_13 = arith.constant 0 : index
    %18 = vector.load %arg6[%c0_12, %c0_13] : memref<32x128xbf16, #tpu.memory_space<vmem>>, vector<32x128xbf16>
    %cst_14 = arith.constant dense<0.000000e+00> : vector<128x128xf32>
    %19 = tpu.matmul %17, %18, %cst_14 {dimension_numbers = #tpu.dot_dimension_numbers<[1], [0], [0], [1], [0, 0, 1, 1], [], []>} : vector<128x32xbf16>, vector<32x128xbf16>, vector<128x128xf32> -> vector<128x128xf32>
    %c0_15 = arith.constant 0 : index
    %c0_16 = arith.constant 0 : index
    %20 = vector.load %arg7[%c0_15, %c0_16] : memref<1x128xf32, #tpu.memory_space<vmem>>, vector<1x128xf32>
    %21 = vector.broadcast %20 : vector<1x128xf32> to vector<128x128xf32>
    %22 = arith.addf %19, %21 : vector<128x128xf32>
    %c0_17 = arith.constant 0 : index
    %c0_18 = arith.constant 0 : index
    %23 = vector.load %arg8[%c0_17, %c0_18] : memref<128x128xf32, #tpu.memory_space<vmem>>, vector<128x128xf32>
    tpu.vector_store %arg8[%c0_17, %c0_18], %22 {strides = array<i32>} : memref<128x128xf32, #tpu.memory_space<vmem>>, vector<128x128xf32>,
    return
  }
  func.func @transform_0(%arg0: i32) -> (i32, i32) {
    %c0_i32 = arith.constant 0 : i32
    %c0_i32_0 = arith.constant 0 : i32
    return %arg0, %c0_i32 : i32, i32
  }
  func.func @transform_1(%arg0: i32) -> (i32, i32) {
    %c0_i32 = arith.constant 0 : i32
    %c0_i32_0 = arith.constant 0 : i32
    %c0_i32_1 = arith.constant 0 : i32
    return %c0_i32, %c0_i32_0 : i32, i32
  }
  func.func @transform_2(%arg0: i32) -> (i32, i32) {
    %c0_i32 = arith.constant 0 : i32
    %c0_i32_0 = arith.constant 0 : i32
    %c0_i32_1 = arith.constant 0 : i32
    return %c0_i32, %c0_i32_0 : i32, i32
  }
  func.func @transform_3(%arg0: i32) -> (i32, i32) {
    %c0_i32 = arith.constant 0 : i32
    %c0_i32_0 = arith.constant 0 : i32
    %c0_i32_1 = arith.constant 0 : i32
    return %c0_i32, %c0_i32_0 : i32, i32
  }
  func.func @transform_4(%arg0: i32) -> (i32, i32) {
    %c0_i32 = arith.constant 0 : i32
    %c0_i32_0 = arith.constant 0 : i32
    %c0_i32_1 = arith.constant 0 : i32
    return %c0_i32, %c0_i32_0 : i32, i32
  }
  func.func @transform_5(%arg0: i32) -> (i32, i32) {
    %c0_i32 = arith.constant 0 : i32
    %c0_i32_0 = arith.constant 0 : i32
    %c0_i32_1 = arith.constant 0 : i32
    return %c0_i32, %c0_i32_0 : i32, i32
  }
  func.func @transform_6(%arg0: i32) -> (i32, i32) {
    %c0_i32 = arith.constant 0 : i32
    %c0_i32_0 = arith.constant 0 : i32
    %c0_i32_1 = arith.constant 0 : i32
    return %c0_i32, %c0_i32_0 : i32, i32
  }
  func.func @transform_7(%arg0: i32) -> (i32, i32) {
    %c0_i32 = arith.constant 0 : i32
    %c0_i32_0 = arith.constant 0 : i32
    return %arg0, %c0_i32 : i32, i32
  }
}

</mosaic_0001>

<bundles_post_ra>
// kernel: mlp_forward.1
= control target key start
LH: loop header
LB: loop body
LE: loop exit
PB: predicated region body
PF: predicated region fallthrough
CT: control target
= control target key end

     0   :  { %s824_s24 = smov 0   ;;  %s950_s0 = inlined_call_operand.vmem [shape: f32[256,16], index: 0, kind: input, shape index: {}]   ;;  %s951_s1 = inlined_call_operand.vmem [shape: bf16[16,32], index: 1, kind: input, shape index: {}]   ;;  %s952_s2 = inlined_call_operand.vmem [shape: f32[1,32], index: 2, kind: input, shape index: {}]   ;;  %s953_s3 = inlined_call_operand.vmem [shape: bf16[32,32], index: 3, kind: input, shape index: {}]   ;;  %s954_s4 = inlined_call_operand.vmem [shape: f32[1,32], index: 4, kind: input, shape index: {}]   ;;  %s955_s5 = inlined_call_operand.vmem [shape: bf16[32,128], index: 5, kind: input, shape index: {}]   ;;  %s956_s6 = inlined_call_operand.vmem [shape: f32[1,128], index: 6, kind: input, shape index: {}]   ;;  %s957_s7 = inlined_call_operand.vmem [shape: f32[256,128], index: 7, kind: output, shape index: {}]  }
   0x1 LB: > { %s700_s25 = sadd.s32 4294967295, %s782_s24   ;;  %p704_p0 = scmp.ge.s32.totalorder %s782_s24, 1  ;;  %s782_s24 = sphi %s824_s24, %s17_s24  }
   0x2   : > { %p238_p1 = scmp.lt.s32.totalorder %s782_s24, 3 }
   0x4   : > { %p239_p2 = pnand %p704_p0, %p238_p1 }
   0x5   : > { %s705_s28 = sshll.u32 (!%p239_p2), %s700_s25, 4 }
   0x6   : > { %242 = sbr.rel (%p239_p2) target bundleno = 558 (0x22e), region = 48  ;;  %p271_p3 = scmp.lt.s32.totalorder (!%p239_p2), %s705_s28, 31 }
   0xb   : > { %v755_v0 = vld [vmem:[%s951_s1] sm:$0xff]  ;;  %s959_s28 = smov (!%p271_p3, %s705_s28), 31  ;;  %vm319_vm0 = vcmask 130048   ;;  %v757_v25 = vld [vmem:[%s953_s3 + $0x8] sm:$0xff]  ;;  %vm437_vm1 = vcmask 261120  }
   0xc   : > { %351 = vmatpush.bf16.msra.mxu0 %v755_v0  ;;  %760 = vmatpush.bf16.msra.mxu3 %v755_v0  ;;  %s706_s29 = sshll.u32 %s959_s28, 3  ;;  %v756_v26 = vld [vmem:[%s953_s3] sm:$0xff] }
   0xd   : > { %s843_s9 = scalar_lea.vmem %s950_s0, %s706_s29  ;;  %468 = vmatpush.bf16.msra.mxu1 %v757_v25  ;;  %v878_v28 = vld [vmem:[%s952_s2] ss:$0 sm:$0xff]  ;;  %s929_s27 = scalar_lea.vmem %s957_s7, %s706_s29 }
   0xe   : > { %v283_v1 = vld [vmem:[%s843_s9] sm:$0xff]  ;;  %v284_v2 = vld [vmem:[%s843_s9 + $0x8] sm:$0xff]  ;;  %v285_v4 = vld [vmem:[%s843_s9 + $0x10] sm:$0xff] }
   0xf   : > { %v299_v3 = vpack.c.bf16 %v284_v2, %v283_v1  ;;  %v286_v5 = vld [vmem:[%s843_s9 + $0x18] sm:$0xff]  ;;  %v287_v7 = vld [vmem:[%s843_s9 + $0x20] sm:$0xff]  ;;  %v288_v8 = vld [vmem:[%s843_s9 + $0x28] sm:$0xff] }
  0x10   : > { %v300_v6 = vpack.c.bf16 %v286_v5, %v285_v4  ;;  %v301_v9 = vpack.c.bf16 %v288_v8, %v287_v7  ;;  %v289_v10 = vld [vmem:[%s843_s9 + $0x30] sm:$0xff]  ;;  %v290_v11 = vld [vmem:[%s843_s9 + $0x38] sm:$0xff]  ;;  %v291_v13 = vld [vmem:[%s843_s9 + $0x40] sm:$0xff]  ;;  %761 = vmatpush.bf16.msrb.mxu3 %v757_v25 }
  0x11   : > { %713 = vmatmul.msk.bf16.vlgmr.msra.gmra.mxu0 %vm319_vm0, %v299_v3  ;;  %v302_v12 = vpack.c.bf16 %v290_v11, %v289_v10  ;;  %v292_v14 = vld [vmem:[%s843_s9 + $0x48] sm:$0xff]  ;;  %v297_v16 = vld [vmem:[%s843_s9 + $0x70] sm:$0xff]  ;;  %v298_v17 = vld [vmem:[%s843_s9 + $0x78] sm:$0xff]  ;;  %469 = vmatpush.bf16.msra.mxu1 %v756_v26 }
  0x12   : > { %v303_v15 = vpack.c.bf16 %v292_v14, %v291_v13  ;;  %v306_v18 = vpack.c.bf16 %v298_v17, %v297_v16  ;;  %v293_v19 = vld [vmem:[%s843_s9 + $0x50] sm:$0xff]  ;;  %v294_v20 = vld [vmem:[%s843_s9 + $0x58] sm:$0xff]  ;;  %v295_v22 = vld [vmem:[%s843_s9 + $0x60] sm:$0xff] }
  0x13   : > { %v304_v21 = vpack.c.bf16 %v294_v20, %v293_v19  ;;  %v296_v23 = vld [vmem:[%s843_s9 + $0x68] sm:$0xff] }
  0x14   : > { %720 = vmatmul.msk.bf16.vlgmr.msra.gmra.mxu3 %vm319_vm0, %v306_v18  ;;  %v305_v24 = vpack.c.bf16 %v296_v23, %v295_v22  ;;  %v758_v18 = vld [vmem:[%s955_s5] sm:$0xff] }
  0x15   : > { %762 = vmatpush.bf16.msrb.mxu3 %v756_v26  ;;  %v774_v23 = vld [vmem:[%s954_s4] ss:$0 sm:$0xff] }
  0x21   : > { %714 = vmatmul.msk.bf16.gmra.mxu0 %vm319_vm0, %v300_v6 }
  0x31   : > { %715 = vmatmul.msk.bf16.gmra.mxu0 %vm319_vm0, %v301_v9 }
  0x41   : > { %716 = vmatmul.msk.bf16.gmra.mxu0 %vm319_vm0, %v302_v12 }
  0x51   : > { %717 = vmatmul.msk.bf16.gmra.mxu0 %vm319_vm0, %v303_v15  ;;  %v759_v15 = vld [vmem:[%s955_s5 + $0x8] sm:$0xff] }
  0x52   : > { %585 = vmatpush.bf16.msra.mxu2 %v759_v15  ;;  %763 = vmatpush.bf16.msra.mxu3 %v759_v15  ;;  %v775_v15 = vld [vmem:[%s956_s6] ss:$0 sm:$0xff] }
  0x56   : > { %586 = vmatpush.bf16.msra.mxu2 %v758_v18  ;;  %764 = vmatpush.bf16.msra.mxu3 %v758_v18 }
  0x61   : > { %718 = vmatmul.msk.bf16.gmra.mxu0 %vm319_vm0, %v304_v21 }
  0x71   : > { %719 = vmatmul.msk.bf16.gmra.mxu0 %vm319_vm0, %v305_v24 }
  0x8e   : > { %v353_v27 = vpop.f32.mrf.mxu0 }
  0x8f   : > { %v354_v29 = vadd.f32 %v878_v28, %v353_v27 }
  0x91   : > { %v393_v32 = vmax.f32 %v354_v29, 0.0 }
  0x96   : > { %v355_v30 = vpop.f32.mrf.mxu0 }
  0x97   : > { %v356_v31 = vadd.f32 %v878_v28, %v355_v30  ;;  %v388_v9 = vpop.f32.mrf.mxu3 }
  0x98   : > { %v389_v16 = vadd.f32 %v878_v28, %v388_v9 }
  0x99   : > { %v394_v33 = vmax.f32 %v356_v31, 0.0 }
  0x9a   : > { %v407_v19 = vmax.f32 %v389_v16, 0.0 }
  0x9b   : > { %v409_v34 = vpack.c.bf16 %v394_v33, %v393_v32 }
  0x9d   : > { %729 = vmatmul.msk.bf16.vlgmr.msra.gmra.mxu1 %vm437_vm1, %v409_v34 }
  0x9e   : > { %v358_v35 = vpop.f32.mrf.mxu0 }
  0x9f   : > { %v359_v36 = vadd.f32 %v878_v28, %v358_v35  ;;  %v390_v14 = vpop.f32.mrf.mxu3 }
  0xa0   : > { %v391_v17 = vadd.f32 %v878_v28, %v390_v14 }
  0xa1   : > { %v395_v39 = vmax.f32 %v359_v36, 0.0 }
  0xa2   : > { %v408_v20 = vmax.f32 %v391_v17, 0.0 }
  0xa4   : > { %v416_v21 = vpack.c.bf16 %v408_v20, %v407_v19 }
  0xa6   : > { %v360_v37 = vpop.f32.mrf.mxu0 }
  0xa7   : > { %v361_v38 = vadd.f32 %v878_v28, %v360_v37 }
  0xa9   : > { %v396_v40 = vmax.f32 %v361_v38, 0.0 }
  0xab   : > { %v410_v41 = vpack.c.bf16 %v396_v40, %v395_v39 }
  0xad   : > { %730 = vmatmul.msk.bf16.gmra.mxu1 %vm437_vm1, %v410_v41 }
  0xae   : > { %v363_v42 = vpop.f32.mrf.mxu0 }
  0xaf   : > { %v364_v43 = vadd.f32 %v878_v28, %v363_v42 }
  0xb1   : > { %v397_v46 = vmax.f32 %v364_v43, 0.0 }
  0xb6   : > { %v365_v44 = vpop.f32.mrf.mxu0 }
  0xb7   : > { %v366_v45 = vadd.f32 %v878_v28, %v365_v44 }
  0xb9   : > { %v398_v47 = vmax.f32 %v366_v45, 0.0 }
  0xbb   : > { %v411_v48 = vpack.c.bf16 %v398_v47, %v397_v46 }
  0xbd   : > { %731 = vmatmul.msk.bf16.gmra.mxu1 %vm437_vm1, %v411_v48 }
  0xbe   : > { %v368_v49 = vpop.f32.mrf.mxu0 }
  0xbf   : > { %v369_v50 = vadd.f32 %v878_v28, %v368_v49 }
  0xc1   : > { %v399_v53 = vmax.f32 %v369_v50, 0.0 }
  0xc6   : > { %v370_v51 = vpop.f32.mrf.mxu0 }
  0xc7   : > { %v371_v52 = vadd.f32 %v878_v28, %v370_v51 }
  0xc9   : > { %v400_v54 = vmax.f32 %v371_v52, 0.0 }
  0xcb   : > { %v412_v55 = vpack.c.bf16 %v400_v54, %v399_v53 }
  0xcd   : > { %732 = vmatmul.msk.bf16.gmra.mxu1 %vm437_vm1, %v412_v55 }
  0xce   : > { %v373_v56 = vpop.f32.mrf.mxu0 }
  0xcf   : > { %v374_v57 = vadd.f32 %v878_v28, %v373_v56 }
  0xd1   : > { %v401_v60 = vmax.f32 %v374_v57, 0.0 }
  0xd6   : > { %v375_v58 = vpop.f32.mrf.mxu0 }
  0xd7   : > { %v376_v59 = vadd.f32 %v878_v28, %v375_v58 }
  0xd9   : > { %v402_v61 = vmax.f32 %v376_v59, 0.0 }
  0xdb   : > { %v413_v62 = vpack.c.bf16 %v402_v61, %v401_v60 }
  0xdd   : > { %733 = vmatmul.msk.bf16.gmra.mxu1 %vm437_vm1, %v413_v62 }
  0xde   : > { %v378_v63 = vpop.f32.mrf.mxu0 }
  0xdf   : > { %v379_v0 = vadd.f32 %v878_v28, %v378_v63 }
  0xe1   : > { %v403_v3 = vmax.f32 %v379_v0, 0.0 }
  0xe6   : > { %v380_v1 = vpop.f32.mrf.mxu0 }
  0xe7   : > { %v381_v2 = vadd.f32 %v878_v28, %v380_v1 }
  0xe9   : > { %v404_v4 = vmax.f32 %v381_v2, 0.0 }
  0xeb   : > { %v414_v5 = vpack.c.bf16 %v404_v4, %v403_v3 }
  0xed   : > { %734 = vmatmul.msk.bf16.gmra.mxu1 %vm437_vm1, %v414_v5 }
  0xee   : > { %v383_v6 = vpop.f32.mrf.mxu0 }
  0xef   : > { %v384_v7 = vadd.f32 %v878_v28, %v383_v6 }
  0xf1   : > { %v405_v11 = vmax.f32 %v384_v7, 0.0 }
  0xf6   : > { %v385_v8 = vpop.f32.mrf.mxu0 }
  0xf7   : > { %v386_v10 = vadd.f32 %v878_v28, %v385_v8 }
  0xf9   : > { %v406_v12 = vmax.f32 %v386_v10, 0.0 }
  0xfb   : > { %v415_v13 = vpack.c.bf16 %v406_v12, %v405_v11 }
  0xfd   : > { %735 = vmatmul.msk.bf16.vlgmr.msrb.gmra.mxu3 %vm437_vm1, %v415_v13 }
 0x10d   : > { %736 = vmatmul.msk.bf16.gmra.mxu3 %vm437_vm1, %v416_v21 }
 0x11a   : > { %v471_v22 = vpop.f32.mrf.mxu1 }
 0x11b   : > { %v472_v24 = vadd.f32 %v774_v23, %v471_v22 }
 0x11d   : > { %v511_v27 = vmax.f32 %v472_v24, 0.0 }
 0x122   : > { %v473_v25 = vpop.f32.mrf.mxu1 }
 0x123   : > { %v474_v26 = vadd.f32 %v774_v23, %v473_v25 }
 0x125   : > { %v512_v28 = vmax.f32 %v474_v26, 0.0 }
 0x127   : > { %v527_v29 = vpack.c.bf16 %v512_v28, %v511_v27 }
 0x129   : > { %745 = vmatmul.msk.bf16.vlgmr.msra.gmra.mxu2 %vm437_vm1, %v527_v29 }
 0x12a   : > { %v476_v30 = vpop.f32.mrf.mxu1 }
 0x12b   : > { %v477_v31 = vadd.f32 %v774_v23, %v476_v30 }
 0x12d   : > { %v513_v34 = vmax.f32 %v477_v31, 0.0 }
 0x132   : > { %v478_v32 = vpop.f32.mrf.mxu1 }
 0x133   : > { %v479_v33 = vadd.f32 %v774_v23, %v478_v32 }
 0x135   : > { %v514_v35 = vmax.f32 %v479_v33, 0.0 }
 0x137   : > { %v528_v36 = vpack.c.bf16 %v514_v35, %v513_v34 }
 0x139   : > { %746 = vmatmul.msk.bf16.gmra.mxu2 %vm437_vm1, %v528_v36 }
 0x13a   : > { %v481_v37 = vpop.f32.mrf.mxu1 }
 0x13b   : > { %v482_v38 = vadd.f32 %v774_v23, %v481_v37 }
 0x13d   : > { %v515_v41 = vmax.f32 %v482_v38, 0.0 }
 0x142   : > { %v483_v39 = vpop.f32.mrf.mxu1 }
 0x143   : > { %v484_v40 = vadd.f32 %v774_v23, %v483_v39 }
 0x145   : > { %v516_v42 = vmax.f32 %v484_v40, 0.0 }
 0x147   : > { %v529_v43 = vpack.c.bf16 %v516_v42, %v515_v41 }
 0x149   : > { %747 = vmatmul.msk.bf16.gmra.mxu2 %vm437_vm1, %v529_v43 }
 0x14a   : > { %v486_v44 = vpop.f32.mrf.mxu1 }
 0x14b   : > { %v487_v45 = vadd.f32 %v774_v23, %v486_v44 }
 0x14d   : > { %v517_v48 = vmax.f32 %v487_v45, 0.0 }
 0x152   : > { %v488_v46 = vpop.f32.mrf.mxu1 }
 0x153   : > { %v489_v47 = vadd.f32 %v774_v23, %v488_v46 }
 0x155   : > { %v518_v49 = vmax.f32 %v489_v47, 0.0 }
 0x157   : > { %v530_v50 = vpack.c.bf16 %v518_v49, %v517_v48 }
 0x159   : > { %748 = vmatmul.msk.bf16.gmra.mxu2 %vm437_vm1, %v530_v50 }
 0x15a   : > { %v491_v51 = vpop.f32.mrf.mxu1 }
 0x15b   : > { %v492_v52 = vadd.f32 %v774_v23, %v491_v51 }
 0x15d   : > { %v519_v55 = vmax.f32 %v492_v52, 0.0 }
 0x162   : > { %v493_v53 = vpop.f32.mrf.mxu1 }
 0x163   : > { %v494_v54 = vadd.f32 %v774_v23, %v493_v53 }
 0x165   : > { %v520_v56 = vmax.f32 %v494_v54, 0.0 }
 0x167   : > { %v531_v57 = vpack.c.bf16 %v520_v56, %v519_v55 }
 0x169   : > { %749 = vmatmul.msk.bf16.gmra.mxu2 %vm437_vm1, %v531_v57 }
 0x16a   : > { %v496_v58 = vpop.f32.mrf.mxu1 }
 0x16b   : > { %v497_v59 = vadd.f32 %v774_v23, %v496_v58 }
 0x16d   : > { %v521_v62 = vmax.f32 %v497_v59, 0.0 }
 0x172   : > { %v498_v60 = vpop.f32.mrf.mxu1 }
 0x173   : > { %v499_v61 = vadd.f32 %v774_v23, %v498_v60 }
 0x175   : > { %v522_v63 = vmax.f32 %v499_v61, 0.0 }
 0x177   : > { %v532_v0 = vpack.c.bf16 %v522_v63, %v521_v62 }
 0x179   : > { %750 = vmatmul.msk.bf16.gmra.mxu2 %vm437_vm1, %v532_v0 }
 0x180   : > { %v501_v1 = vpop.f32.mrf.mxu3 }
 0x181   : > { %v502_v2 = vadd.f32 %v774_v23, %v501_v1 }
 0x183   : > { %v523_v5 = vmax.f32 %v502_v2, 0.0 }
 0x188   : > { %v503_v3 = vpop.f32.mrf.mxu3 }
 0x189   : > { %v504_v4 = vadd.f32 %v774_v23, %v503_v3 }
 0x18b   : > { %v524_v6 = vmax.f32 %v504_v4, 0.0 }
 0x18d   : > { %v533_v7 = vpack.c.bf16 %v524_v6, %v523_v5 }
 0x18f   : > { %751 = vmatmul.msk.bf16.vlgmr.msra.gmra.mxu3 %vm437_vm1, %v533_v7 }
 0x190   : > { %v506_v8 = vpop.f32.mrf.mxu3 }
 0x191   : > { %v507_v9 = vadd.f32 %v774_v23, %v506_v8 }
 0x193   : > { %v525_v12 = vmax.f32 %v507_v9, 0.0 }
 0x198   : > { %v508_v10 = vpop.f32.mrf.mxu3 }
 0x199   : > { %v509_v11 = vadd.f32 %v774_v23, %v508_v10 }
 0x19b   : > { %v526_v13 = vmax.f32 %v509_v11, 0.0 }
 0x19d   : > { %v534_v14 = vpack.c.bf16 %v526_v13, %v525_v12 }
 0x19f   : > { %752 = vmatmul.msk.bf16.gmra.mxu3 %vm437_vm1, %v534_v14 }
 0x1ac   : > { %v588_v16 = vpop.f32.mrf.mxu2 }
 0x1ad   : > { %v589_v17 = vadd.f32 %v775_v15, %v588_v16 }
 0x1af   : > { %628 = vst [vmem:[%s929_s27] sm:$0xff] %v589_v17 }
 0x1b4   : > { %v590_v18 = vpop.f32.mrf.mxu2 }
 0x1b5   : > { %v591_v19 = vadd.f32 %v775_v15, %v590_v18 }
 0x1b7   : > { %629 = vst [vmem:[%s929_s27 + $0x8] sm:$0xff] %v591_v19 }
 0x1bc   : > { %v593_v20 = vpop.f32.mrf.mxu2 }
 0x1bd   : > { %v594_v21 = vadd.f32 %v775_v15, %v593_v20 }
 0x1bf   : > { %630 = vst [vmem:[%s929_s27 + $0x10] sm:$0xff] %v594_v21 }
 0x1c4   : > { %v595_v22 = vpop.f32.mrf.mxu2 }
 0x1c5   : > { %v596_v23 = vadd.f32 %v775_v15, %v595_v22 }
 0x1c7   : > { %631 = vst [vmem:[%s929_s27 + $0x18] sm:$0xff] %v596_v23 }
 0x1cc   : > { %v598_v24 = vpop.f32.mrf.mxu2 }
 0x1cd   : > { %v599_v25 = vadd.f32 %v775_v15, %v598_v24 }
 0x1cf   : > { %632 = vst [vmem:[%s929_s27 + $0x20] sm:$0xff] %v599_v25 }
 0x1d4   : > { %v600_v26 = vpop.f32.mrf.mxu2 }
 0x1d5   : > { %v601_v27 = vadd.f32 %v775_v15, %v600_v26 }
 0x1d7   : > { %633 = vst [vmem:[%s929_s27 + $0x28] sm:$0xff] %v601_v27 }
 0x1dc   : > { %v603_v28 = vpop.f32.mrf.mxu2 }
 0x1dd   : > { %v604_v29 = vadd.f32 %v775_v15, %v603_v28 }
 0x1df   : > { %634 = vst [vmem:[%s929_s27 + $0x30] sm:$0xff] %v604_v29 }
 0x1e4   : > { %v605_v30 = vpop.f32.mrf.mxu2 }
 0x1e5   : > { %v606_v31 = vadd.f32 %v775_v15, %v605_v30 }
 0x1e7   : > { %635 = vst [vmem:[%s929_s27 + $0x38] sm:$0xff] %v606_v31 }
 0x1ec   : > { %v608_v32 = vpop.f32.mrf.mxu2 }
 0x1ed   : > { %v609_v33 = vadd.f32 %v775_v15, %v608_v32 }
 0x1ef   : > { %636 = vst [vmem:[%s929_s27 + $0x40] sm:$0xff] %v609_v33 }
 0x1f4   : > { %v610_v34 = vpop.f32.mrf.mxu2 }
 0x1f5   : > { %v611_v35 = vadd.f32 %v775_v15, %v610_v34 }
 0x1f7   : > { %637 = vst [vmem:[%s929_s27 + $0x48] sm:$0xff] %v611_v35 }
 0x1fc   : > { %v613_v36 = vpop.f32.mrf.mxu2 }
 0x1fd   : > { %v614_v37 = vadd.f32 %v775_v15, %v613_v36 }
 0x1ff   : > { %638 = vst [vmem:[%s929_s27 + $0x50] sm:$0xff] %v614_v37 }
 0x204   : > { %v615_v38 = vpop.f32.mrf.mxu2 }
 0x205   : > { %v616_v39 = vadd.f32 %v775_v15, %v615_v38 }
 0x207   : > { %639 = vst [vmem:[%s929_s27 + $0x58] sm:$0xff] %v616_v39 }
 0x212   : > { %v618_v40 = vpop.f32.mrf.mxu3 }
 0x213   : > { %v619_v41 = vadd.f32 %v775_v15, %v618_v40 }
 0x215   : > { %640 = vst [vmem:[%s929_s27 + $0x60] sm:$0xff] %v619_v41 }
 0x21a   : > { %v620_v42 = vpop.f32.mrf.mxu3 }
 0x21b   : > { %v621_v43 = vadd.f32 %v775_v15, %v620_v42 }
 0x21d   : > { %641 = vst [vmem:[%s929_s27 + $0x68] sm:$0xff] %v621_v43 }
 0x222   : > { %v623_v44 = vpop.f32.mrf.mxu3 }
 0x223   : > { %v624_v45 = vadd.f32 %v775_v15, %v623_v44 }
 0x225   : > { %642 = vst [vmem:[%s929_s27 + $0x70] sm:$0xff] %v624_v45 }
 0x22a   : > { %v625_v46 = vpop.f32.mrf.mxu3 }
 0x22b   : > { %v626_v47 = vadd.f32 %v775_v15, %v625_v46 }
 0x22d   : > { %643 = vst [vmem:[%s929_s27 + $0x78] sm:$0xff] %v626_v47 }
 0x22e PF: > { %s17_s24 = sadd.s32 1, %s782_s24  }
 0x22f   : > { %p14_p4 = scmp.ge.s32.totalorder %s17_s24, 4  }
 0x231   :  { %16 = sbr.rel (!%p14_p4) target bundleno = 1 (0x1), region = 78 }

</bundles_post_ra>
